<compile_context>
chip_gen: v7x
topology: tpu7x:2x2x1
jax: 0.10.0
libtpu: 0.0.40
codegen_flags: <defaults>
</compile_context>

<pallas_src>
import functools

import jax
import jax.numpy as jnp
import numpy as np
from jax.experimental import pallas as pl
from jax.experimental.pallas import tpu as pltpu


def _round_up(x, m):
    return ((x + m - 1) // m) * m


def usr_emb_kernel(x_ref, ul_ref, tbl_ref, o_ref, *, n_valid_users, emb_size, pack):
    """One token tile.

    x_ref:   (TM, pack)    int32    -- `pack` consecutive raw user ids per row
    ul_ref:  (1, Vp)       int32    -- USERLIST padded with INT32_MIN sentinel
    tbl_ref: (Vp, 2*E)     bfloat16 -- fused [hi | lo] split of the f32 table
    o_ref:   (TM, pack*E)  float32  -- pack tokens * E lanes (lane-dense store)
    """
    ul = ul_ref[...]                                            # (1, Vp)
    tbl = tbl_ref[...]                                          # (Vp, 2E)
    x = x_ref[...]                                              # (TM, pack)
    vp = ul.shape[1]

    # Single (1, Vp) lane-index row; broadcasting supplies the token axis.
    vidx = jax.lax.broadcasted_iota(jnp.int32, (1, vp), 1)

    cols = []
    for c in range(pack):
        xc = x[:, c:c + 1]                                      # (TM, 1)
        matches = xc == ul                                      # (TM, Vp)
        # First matching index via lane-min.  "No match" and sentinel-pad hits
        # (only possible when x == INT32_MIN, the pad sentinel) both land at
        # >= n_valid_users and are remapped to 0, matching the module's
        # "not found -> index 0" semantics.
        cand = jnp.where(matches, vidx, vp)                     # (TM, Vp)
        idx = jnp.min(cand, axis=1, keepdims=True)              # (TM, 1)
        idx = jnp.where(idx >= n_valid_users, 0, idx)
        # One-hot gather on the MXU: bf16 one-hot (exact 0/1) against the fused
        # [hi | lo] table with f32 accumulation; hi + lo summed in f32 keeps
        # ~1e-5 relative accuracy vs. the original f32 embedding table.
        onehot = (vidx == idx).astype(jnp.bfloat16)             # (TM, Vp)
        acc = jnp.dot(onehot, tbl, preferred_element_type=jnp.float32)  # (TM, 2E)
        cols.append(acc[:, :emb_size] + acc[:, emb_size:])      # (TM, E)

    # Lane-concat `pack` tokens into one 128-lane-wide row -> unmasked stores.
    o_ref[...] = jnp.concatenate(cols, axis=1) if pack > 1 else cols[0]


def prepare_usr_emb_tables(userlist, emb_weight):
    """One-time (init-side) prep: pad USERLIST with an INT32_MIN sentinel and
    build the fused bf16 [hi | lo] table.  Do NOT re-run per forward call."""
    userlist = jnp.asarray(userlist, jnp.int32)
    emb_weight = jnp.asarray(emb_weight, jnp.float32)
    V, E = emb_weight.shape
    Vp = _round_up(V, 128)

    sentinel = jnp.iinfo(jnp.int32).min
    ul_pad = jnp.full((1, Vp), sentinel, jnp.int32).at[0, :V].set(userlist)

    emb_pad = jnp.zeros((Vp, E), jnp.float32).at[:V, :].set(emb_weight)
    hi = emb_pad.astype(jnp.bfloat16)
    lo = (emb_pad - hi.astype(jnp.float32)).astype(jnp.bfloat16)
    table_hilo = jnp.concatenate([hi, lo], axis=1)              # (Vp, 2E)
    return ul_pad, table_hilo, V


def _pick_token_tile(n_tokens, align, tn_req):
    """Token tile: multiple of `align`, large enough to amortize per-step
    overhead, prefers an exact divisor of N (no padded-tail slice copy), and
    gives >=2 grid steps for v7x megacore when there is enough work."""
    n_aligned = _round_up(n_tokens, align)
    tn = min(_round_up(tn_req, align), n_aligned)
    if tn == n_aligned and n_tokens > 4096:
        tn = _round_up(n_aligned // 2, align)      # let both v7x TCs work
    if n_tokens % align == 0:
        for cand in range(tn, 0, -align):
            if n_tokens % cand == 0:
                if 4 * cand >= tn:                 # don't shrink below tn/4
                    tn = cand
                break
    return max(tn, align)


def usr_emb_forward(x_ids, ul_pad, table_hilo, n_users, *, tn_tokens=1024):
    """x_ids: [B, S] raw user ids; returns [B, S, E] float32 embeddings."""
    B, S = x_ids.shape
    Vp, twoE = table_hilo.shape
    E = twoE // 2
    N = B * S

    # Pack tokens so each output row is 128 lanes wide (unmasked vst + dense DMA).
    pack = 128 // E if (E < 128 and 128 % E == 0) else 1
    align = 8 * pack

    tn = _pick_token_tile(N, align, tn_tokens)
    Np = _round_up(N, tn)
    TM = tn // pack

    x_flat = jnp.zeros((Np,), jnp.int32).at[:N].set(
        x_ids.reshape(-1).astype(jnp.int32))
    x_packed = x_flat.reshape(Np // pack, pack)

    # Conservative VMEM estimate (double-buffered streams + resident tables +
    # per-column lookup intermediates); raise the scoped limit only if needed
    # (cap at 64 MiB so the same setting is legal on v7x).
    est_vmem = (2 * Vp * 4 + 2 * Vp * twoE * 2
                + 2 * TM * (pack * 4 + pack * E * 4)
                + TM * Vp * 12)
    cparams = dict(dimension_semantics=("parallel",))
    if est_vmem > 12 * 1024 * 1024:
        cparams["vmem_limit_bytes"] = int(min(est_vmem + (8 << 20), 64 << 20))
    # TODO(synk): for very large V*E on v7x (64 MiB VMEM), single-buffer the
    # resident table (pl.Buffered(1)) or add a grid axis over E.

    out = pl.pallas_call(
        functools.partial(usr_emb_kernel, n_valid_users=n_users,
                          emb_size=E, pack=pack),
        out_shape=jax.ShapeDtypeStruct((Np // pack, pack * E), jnp.float32),
        grid_spec=pltpu.PrefetchScalarGridSpec(
            num_scalar_prefetch=0,
            grid=(Np // tn,),
            in_specs=[
                pl.BlockSpec((TM, pack), lambda i: (i, 0)),   # streamed tokens
                pl.BlockSpec((1, Vp), lambda i: (0, 0)),      # VMEM-resident
                pl.BlockSpec((Vp, twoE), lambda i: (0, 0)),   # VMEM-resident
            ],
            out_specs=pl.BlockSpec((TM, pack * E), lambda i: (i, 0)),
        ),
        compiler_params=pltpu.CompilerParams(**cparams),
    )(x_packed, ul_pad, table_hilo)

    # (Np/pack, pack*E) is row-major-identical to (Np, E); reshapes are free.
    out_flat = out.reshape(-1)
    if Np != N:
        out_flat = out_flat[: N * E]
    return out_flat.reshape(B, S, E)


if __name__ == "__main__":
    # --- deterministic "param" setup (mirrors USR_EMB.__init__) ---
    usr_size_param = 15                       # param.usr_size
    usr_emb_size = 32                         # param.usr_emb_size
    raw_userlist = np.arange(100, 100 + usr_size_param, dtype=np.int64)  # param.USERLIST
    USERLIST = np.append(-1, raw_userlist).astype(np.int32)   # len = usr_size + 1
    usr_size = usr_size_param + 1

    key = jax.random.PRNGKey(0)
    k_emb, k_x = jax.random.split(key)
    emb_table = jax.random.normal(k_emb, (usr_size, usr_emb_size), jnp.float32)

    # One-time table prep (the __init__-side work, hoisted out of forward).
    ul_pad, table_hilo, n_users = prepare_usr_emb_tables(USERLIST, emb_table)

    # --- example input: batch=2, seq=8 raw user ids (some unknown -> index 0) ---
    B, S = 2, 8
    choices = np.concatenate([raw_userlist.astype(np.int32),
                              np.array([999, -1], np.int32)])
    pick = jax.random.randint(k_x, (B, S), 0, choices.shape[0])
    x_ids = jnp.asarray(choices)[pick].astype(jnp.int32)

    out = usr_emb_forward(x_ids, ul_pad, table_hilo, n_users)
    out = jax.block_until_ready(out)

    # --- reference check (plain numpy, same semantics as the PyTorch forward) ---
    x_np = np.asarray(x_ids)
    usr2id = np.zeros((B, S), np.int64)
    for b in range(B):
        for s in range(S):
            w = np.where(USERLIST == x_np[b, s])[0]
            usr2id[b, s] = w[0] if w.size else 0
    ref = np.asarray(emb_table)[usr2id]
    # hi/lo bf16 split reproduces the f32 table to ~1e-5 relative accuracy.
    np.testing.assert_allclose(np.asarray(out), ref, rtol=1e-4, atol=1e-5)
    assert out.shape == (B, S, usr_emb_size)

    print("KERNEL_OK")
</pallas_src>

<mosaic_0001>
module attributes {stable_mosaic.version = 11 : i64} {
  func.func @usr_emb_kernel(%arg0: i32, %arg1: memref<8x4xi32, #tpu.memory_space<vmem>>, %arg2: memref<1x128xi32, #tpu.memory_space<vmem>>, %arg3: memref<128x64xbf16, #tpu.memory_space<vmem>>, %arg4: memref<8x128xf32, #tpu.memory_space<vmem>>) attributes {dimension_semantics = [#tpu.dimension_semantics<parallel>], iteration_bounds = array<i64: 1>, scalar_prefetch = 0 : i64, scratch_operands = 0 : i64, tpu.core_type = #tpu.core_type<tc>, window_params = [{transform_indices = @transform_0, window_bounds = array<i64: 8, 4>}, {pipeline_mode = #tpu.pipeline_mode<synchronous>, transform_indices = @transform_1, window_bounds = array<i64: 1, 128>}, {pipeline_mode = #tpu.pipeline_mode<synchronous>, transform_indices = @transform_2, window_bounds = array<i64: 128, 64>}, {transform_indices = @transform_3, window_bounds = array<i64: 8, 128>}]} {
    %c0 = arith.constant 0 : index
    %c0_0 = arith.constant 0 : index
    %0 = vector.load %arg2[%c0, %c0_0] : memref<1x128xi32, #tpu.memory_space<vmem>>, vector<1x128xi32>
    %c0_1 = arith.constant 0 : index
    %c0_2 = arith.constant 0 : index
    %1 = vector.load %arg3[%c0_1, %c0_2] : memref<128x64xbf16, #tpu.memory_space<vmem>>, vector<128x64xbf16>
    %c0_3 = arith.constant 0 : index
    %c0_4 = arith.constant 0 : index
    %2 = vector.load %arg1[%c0_3, %c0_4] : memref<8x4xi32, #tpu.memory_space<vmem>>, vector<8x4xi32>
    %3 = tpu.iota {dimensions = array<i32: 1>} : vector<1x128xi32>
    %4 = vector.extract_strided_slice %2 {offsets = [0, 0], sizes = [8, 1], strides = [1, 1]} : vector<8x4xi32> to vector<8x1xi32>
    %5 = vector.broadcast %4 : vector<8x1xi32> to vector<8x128xi32>
    %6 = vector.broadcast %0 : vector<1x128xi32> to vector<8x128xi32>
    %7 = arith.cmpi eq, %5, %6 : vector<8x128xi32>
    %c128_i32 = arith.constant 128 : i32
    %8 = vector.shape_cast %3 : vector<1x128xi32> to vector<1x128xi32>
    %9 = vector.broadcast %8 : vector<1x128xi32> to vector<8x128xi32>
    %10 = vector.broadcast %c128_i32 : i32 to vector<8x128xi32>
    %11 = arith.select %7, %9, %10 : vector<8x128xi1>, vector<8x128xi32>
    %cst = arith.constant dense<2147483647> : vector<8xi32>
    %12 = vector.multi_reduction <minsi>, %11, %cst [1] : vector<8x128xi32> to vector<8xi32>
    %13 = vector.shape_cast %12 : vector<8xi32> to vector<8x1xi32>
    %c16_i32 = arith.constant 16 : i32
    %14 = vector.broadcast %c16_i32 : i32 to vector<8x1xi32>
    %15 = arith.cmpi sge, %13, %14 : vector<8x1xi32>
    %c0_i32 = arith.constant 0 : i32
    %16 = vector.broadcast %c0_i32 : i32 to vector<8x1xi32>
    %17 = arith.select %15, %16, %13 : vector<8x1xi1>, vector<8x1xi32>
    %18 = vector.broadcast %3 : vector<1x128xi32> to vector<8x128xi32>
    %19 = vector.broadcast %17 : vector<8x1xi32> to vector<8x128xi32>
    %20 = arith.cmpi eq, %18, %19 : vector<8x128xi32>
    %21 = arith.extui %20 : vector<8x128xi1> to vector<8x128xi32>
    %22 = arith.sitofp %21 : vector<8x128xi32> to vector<8x128xf32>
    %23 = arith.truncf %22 : vector<8x128xf32> to vector<8x128xbf16>
    %cst_5 = arith.constant dense<0.000000e+00> : vector<8x64xf32>
    %24 = tpu.matmul %23, %1, %cst_5 {dimension_numbers = #tpu.dot_dimension_numbers<[1], [0], [0], [1], [0, 0, 1, 1], [], []>} : vector<8x128xbf16>, vector<128x64xbf16>, vector<8x64xf32> -> vector<8x64xf32>
    %25 = vector.extract_strided_slice %24 {offsets = [0, 0], sizes = [8, 32], strides = [1, 1]} : vector<8x64xf32> to vector<8x32xf32>
    %26 = vector.extract_strided_slice %24 {offsets = [0, 32], sizes = [8, 32], strides = [1, 1]} : vector<8x64xf32> to vector<8x32xf32>
    %27 = arith.addf %25, %26 : vector<8x32xf32>
    %28 = vector.extract_strided_slice %2 {offsets = [0, 1], sizes = [8, 1], strides = [1, 1]} : vector<8x4xi32> to vector<8x1xi32>
    %29 = vector.broadcast %28 : vector<8x1xi32> to vector<8x128xi32>
    %30 = vector.broadcast %0 : vector<1x128xi32> to vector<8x128xi32>
    %31 = arith.cmpi eq, %29, %30 : vector<8x128xi32>
    %c128_i32_6 = arith.constant 128 : i32
    %32 = vector.shape_cast %3 : vector<1x128xi32> to vector<1x128xi32>
    %33 = vector.broadcast %32 : vector<1x128xi32> to vector<8x128xi32>
    %34 = vector.broadcast %c128_i32_6 : i32 to vector<8x128xi32>
    %35 = arith.select %31, %33, %34 : vector<8x128xi1>, vector<8x128xi32>
    %cst_7 = arith.constant dense<2147483647> : vector<8xi32>
    %36 = vector.multi_reduction <minsi>, %35, %cst_7 [1] : vector<8x128xi32> to vector<8xi32>
    %37 = vector.shape_cast %36 : vector<8xi32> to vector<8x1xi32>
    %c16_i32_8 = arith.constant 16 : i32
    %38 = vector.broadcast %c16_i32_8 : i32 to vector<8x1xi32>
    %39 = arith.cmpi sge, %37, %38 : vector<8x1xi32>
    %c0_i32_9 = arith.constant 0 : i32
    %40 = vector.broadcast %c0_i32_9 : i32 to vector<8x1xi32>
    %41 = arith.select %39, %40, %37 : vector<8x1xi1>, vector<8x1xi32>
    %42 = vector.broadcast %3 : vector<1x128xi32> to vector<8x128xi32>
    %43 = vector.broadcast %41 : vector<8x1xi32> to vector<8x128xi32>
    %44 = arith.cmpi eq, %42, %43 : vector<8x128xi32>
    %45 = arith.extui %44 : vector<8x128xi1> to vector<8x128xi32>
    %46 = arith.sitofp %45 : vector<8x128xi32> to vector<8x128xf32>
    %47 = arith.truncf %46 : vector<8x128xf32> to vector<8x128xbf16>
    %cst_10 = arith.constant dense<0.000000e+00> : vector<8x64xf32>
    %48 = tpu.matmul %47, %1, %cst_10 {dimension_numbers = #tpu.dot_dimension_numbers<[1], [0], [0], [1], [0, 0, 1, 1], [], []>} : vector<8x128xbf16>, vector<128x64xbf16>, vector<8x64xf32> -> vector<8x64xf32>
    %49 = vector.extract_strided_slice %48 {offsets = [0, 0], sizes = [8, 32], strides = [1, 1]} : vector<8x64xf32> to vector<8x32xf32>
    %50 = vector.extract_strided_slice %48 {offsets = [0, 32], sizes = [8, 32], strides = [1, 1]} : vector<8x64xf32> to vector<8x32xf32>
    %51 = arith.addf %49, %50 : vector<8x32xf32>
    %52 = vector.extract_strided_slice %2 {offsets = [0, 2], sizes = [8, 1], strides = [1, 1]} : vector<8x4xi32> to vector<8x1xi32>
    %53 = vector.broadcast %52 : vector<8x1xi32> to vector<8x128xi32>
    %54 = vector.broadcast %0 : vector<1x128xi32> to vector<8x128xi32>
    %55 = arith.cmpi eq, %53, %54 : vector<8x128xi32>
    %c128_i32_11 = arith.constant 128 : i32
    %56 = vector.shape_cast %3 : vector<1x128xi32> to vector<1x128xi32>
    %57 = vector.broadcast %56 : vector<1x128xi32> to vector<8x128xi32>
    %58 = vector.broadcast %c128_i32_11 : i32 to vector<8x128xi32>
    %59 = arith.select %55, %57, %58 : vector<8x128xi1>, vector<8x128xi32>
    %cst_12 = arith.constant dense<2147483647> : vector<8xi32>
    %60 = vector.multi_reduction <minsi>, %59, %cst_12 [1] : vector<8x128xi32> to vector<8xi32>
    %61 = vector.shape_cast %60 : vector<8xi32> to vector<8x1xi32>
    %c16_i32_13 = arith.constant 16 : i32
    %62 = vector.broadcast %c16_i32_13 : i32 to vector<8x1xi32>
    %63 = arith.cmpi sge, %61, %62 : vector<8x1xi32>
    %c0_i32_14 = arith.constant 0 : i32
    %64 = vector.broadcast %c0_i32_14 : i32 to vector<8x1xi32>
    %65 = arith.select %63, %64, %61 : vector<8x1xi1>, vector<8x1xi32>
    %66 = vector.broadcast %3 : vector<1x128xi32> to vector<8x128xi32>
    %67 = vector.broadcast %65 : vector<8x1xi32> to vector<8x128xi32>
    %68 = arith.cmpi eq, %66, %67 : vector<8x128xi32>
    %69 = arith.extui %68 : vector<8x128xi1> to vector<8x128xi32>
    %70 = arith.sitofp %69 : vector<8x128xi32> to vector<8x128xf32>
    %71 = arith.truncf %70 : vector<8x128xf32> to vector<8x128xbf16>
    %cst_15 = arith.constant dense<0.000000e+00> : vector<8x64xf32>
    %72 = tpu.matmul %71, %1, %cst_15 {dimension_numbers = #tpu.dot_dimension_numbers<[1], [0], [0], [1], [0, 0, 1, 1], [], []>} : vector<8x128xbf16>, vector<128x64xbf16>, vector<8x64xf32> -> vector<8x64xf32>
    %73 = vector.extract_strided_slice %72 {offsets = [0, 0], sizes = [8, 32], strides = [1, 1]} : vector<8x64xf32> to vector<8x32xf32>
    %74 = vector.extract_strided_slice %72 {offsets = [0, 32], sizes = [8, 32], strides = [1, 1]} : vector<8x64xf32> to vector<8x32xf32>
    %75 = arith.addf %73, %74 : vector<8x32xf32>
    %76 = vector.extract_strided_slice %2 {offsets = [0, 3], sizes = [8, 1], strides = [1, 1]} : vector<8x4xi32> to vector<8x1xi32>
    %77 = vector.broadcast %76 : vector<8x1xi32> to vector<8x128xi32>
    %78 = vector.broadcast %0 : vector<1x128xi32> to vector<8x128xi32>
    %79 = arith.cmpi eq, %77, %78 : vector<8x128xi32>
    %c128_i32_16 = arith.constant 128 : i32
    %80 = vector.shape_cast %3 : vector<1x128xi32> to vector<1x128xi32>
    %81 = vector.broadcast %80 : vector<1x128xi32> to vector<8x128xi32>
    %82 = vector.broadcast %c128_i32_16 : i32 to vector<8x128xi32>
    %83 = arith.select %79, %81, %82 : vector<8x128xi1>, vector<8x128xi32>
    %cst_17 = arith.constant dense<2147483647> : vector<8xi32>
    %84 = vector.multi_reduction <minsi>, %83, %cst_17 [1] : vector<8x128xi32> to vector<8xi32>
    %85 = vector.shape_cast %84 : vector<8xi32> to vector<8x1xi32>
    %c16_i32_18 = arith.constant 16 : i32
    %86 = vector.broadcast %c16_i32_18 : i32 to vector<8x1xi32>
    %87 = arith.cmpi sge, %85, %86 : vector<8x1xi32>
    %c0_i32_19 = arith.constant 0 : i32
    %88 = vector.broadcast %c0_i32_19 : i32 to vector<8x1xi32>
    %89 = arith.select %87, %88, %85 : vector<8x1xi1>, vector<8x1xi32>
    %90 = vector.broadcast %3 : vector<1x128xi32> to vector<8x128xi32>
    %91 = vector.broadcast %89 : vector<8x1xi32> to vector<8x128xi32>
    %92 = arith.cmpi eq, %90, %91 : vector<8x128xi32>
    %93 = arith.extui %92 : vector<8x128xi1> to vector<8x128xi32>
    %94 = arith.sitofp %93 : vector<8x128xi32> to vector<8x128xf32>
    %95 = arith.truncf %94 : vector<8x128xf32> to vector<8x128xbf16>
    %cst_20 = arith.constant dense<0.000000e+00> : vector<8x64xf32>
    %96 = tpu.matmul %95, %1, %cst_20 {dimension_numbers = #tpu.dot_dimension_numbers<[1], [0], [0], [1], [0, 0, 1, 1], [], []>} : vector<8x128xbf16>, vector<128x64xbf16>, vector<8x64xf32> -> vector<8x64xf32>
    %97 = vector.extract_strided_slice %96 {offsets = [0, 0], sizes = [8, 32], strides = [1, 1]} : vector<8x64xf32> to vector<8x32xf32>
    %98 = vector.extract_strided_slice %96 {offsets = [0, 32], sizes = [8, 32], strides = [1, 1]} : vector<8x64xf32> to vector<8x32xf32>
    %99 = arith.addf %97, %98 : vector<8x32xf32>
    %100 = tpu.concatenate %27, %51, %75, %99 in 1 : vector<8x32xf32>, vector<8x32xf32>, vector<8x32xf32>, vector<8x32xf32> -> vector<8x128xf32>
    %c0_21 = arith.constant 0 : index
    %c0_22 = arith.constant 0 : index
    %101 = vector.load %arg4[%c0_21, %c0_22] : memref<8x128xf32, #tpu.memory_space<vmem>>, vector<8x128xf32>
    tpu.vector_store %arg4[%c0_21, %c0_22], %100 {strides = array<i32>} : memref<8x128xf32, #tpu.memory_space<vmem>>, vector<8x128xf32>,
    return
  }
  func.func @transform_0(%arg0: i32) -> (i32, i32) {
    %c0_i32 = arith.constant 0 : i32
    %c0_i32_0 = arith.constant 0 : i32
    return %arg0, %c0_i32 : i32, i32
  }
  func.func @transform_1(%arg0: i32) -> (i32, i32) {
    %c0_i32 = arith.constant 0 : i32
    %c0_i32_0 = arith.constant 0 : i32
    %c0_i32_1 = arith.constant 0 : i32
    return %c0_i32, %c0_i32_0 : i32, i32
  }
  func.func @transform_2(%arg0: i32) -> (i32, i32) {
    %c0_i32 = arith.constant 0 : i32
    %c0_i32_0 = arith.constant 0 : i32
    %c0_i32_1 = arith.constant 0 : i32
    return %c0_i32, %c0_i32_0 : i32, i32
  }
  func.func @transform_3(%arg0: i32) -> (i32, i32) {
    %c0_i32 = arith.constant 0 : i32
    %c0_i32_0 = arith.constant 0 : i32
    return %arg0, %c0_i32 : i32, i32
  }
}

</mosaic_0001>

<bundles_post_ra>
// kernel: tpu_custom_call.1
= control target key start
LH: loop header
LB: loop body
LE: loop exit
PB: predicated region body
PF: predicated region fallthrough
CT: control target
= control target key end

     0   :  { %v586_v1 = vmov 2   ;;  %v587_v2 = vmov 0   ;;  %v588_v3 = vmov 3   ;;  %v589_v4 = vmov 1   ;;  %s765_s0 = inlined_call_operand.vmem [shape: s32[8,4], index: 0, kind: input, shape index: {}]   ;;  %s766_s1 = inlined_call_operand.vmem [shape: s32[1,128], index: 1, kind: input, shape index: {}]   ;;  %s767_s2 = inlined_call_operand.vmem [shape: bf16[128,64], index: 2, kind: input, shape index: {}]   ;;  %s768_s3 = inlined_call_operand.hbm [shape: f32[8,128], index: 3, kind: output, shape index: {}]  }
   0x1   :  { %v33_v0 = vld [vmem:[%s765_s0] sm:$0xff]  ;;  %551 = vset.pattern.permute.xlu1 %v586_v1  ;;  %549 = vset.pattern.permute.xlu0 %v587_v2 }
   0x2   :  { %229 = vperm.xlu1 %551, %v33_v0   ;;  %37 = vperm.xlu0 %549, %v33_v0  }
   0x6   :  { %552 = vset.pattern.permute.xlu1 %v588_v3  ;;  %550 = vset.pattern.permute.xlu0 %v589_v4 }
   0x7   :  { %299 = vperm.xlu1 %552, %v33_v0   ;;  %159 = vperm.xlu0 %550, %v33_v0  }
   0x8   :  { %8 = vsyncpa [#allocation3], 0  ;;  %v34_v5 = vlaneseq  ;;  %v401_v7 = vld [vmem:[%s766_s1] ss:$0 sm:$0xff]  ;;  %v590_v25 = vmov 0.0   ;;  %v643_v26 = vld [vmem:[%s767_s2 + $0x8] sm:$0xff]  }
   0x9   :  { %v635_v24 = vld [vmem:[%s767_s2] sm:$0xff]   ;;  %458 = vmatprep.subr.bf16.mxu0 %v590_v25  ;;  %478 = vmatprep.subr.bf16.mxu1 %v590_v25  ;;  %v652_v27 = vld [vmem:[%s767_s2 + $0x10] sm:$0xff]   ;;  %v661_v28 = vld [vmem:[%s767_s2 + $0x18] sm:$0xff]   ;;  %vm591_vm8 = vmmov 0   ;;  %v592_v60 = vmov 1.0|1.0  }
   0xa   :  { %v620_v6 = vand.u32 127, %v34_v5  ;;  %459 = vmatpush3.bf16.msra.mxu0 %v635_v24  ;;  %479 = vmatpush3.bf16.msra.mxu1 %v635_v24  ;;  %v670_v29 = vld [vmem:[%s767_s2 + $0x20] sm:$0xff]   ;;  %v679_v30 = vld [vmem:[%s767_s2 + $0x28] sm:$0xff]   ;;  %v695_v47 = vld [vmem:[%s767_s2 + $0x30] sm:$0xff]   ;;  %s594_s30 = smov 32   ;;  %s595_s4 = smov 64  }
   0xb   :  { %553 = vset.pattern.permute.xlu0 %v588_v3  ;;  %460 = vmatprep.subr.bf16.mxu0 %v590_v25  ;;  %v704_v48 = vld [vmem:[%s767_s2 + $0x38] sm:$0xff]   ;;  %s593_s2 = smov 96   ;;  %s596_s5 = smov [#allocation2]  }
   0xc   :  { %480 = vmatprep.subr.bf16.mxu1 %v590_v25  ;;  %474 = vmatprep.mubr.msk.bf16.mxu0 %vm591_vm8, %v590_v25  ;;  %s393_s6 = sshll.u32 %s596_s5, 4  ;;  %s394_s6 = int_to_ptr.vmem [resolvable:$true] %s393_s6 }
   0xd   :  { %494 = vmatprep.mubr.msk.bf16.mxu1 %vm591_vm8, %v590_v25  ;;  %s562_s7 = scalar_lea.vmem %s394_s6, 128  ;;  %p567_p1 = scmp.lt.s32.totalorder %s394_s6, %s394_s6 }
   0xe   :  { %461 = vmatpush3.bf16.msra.mxu0 %v643_v26  ;;  %481 = vmatpush3.bf16.msra.mxu1 %v643_v26  ;;  %p563_p0 = scmp.ne.s32.totalorder %s394_s6, %s562_s7  ;;  %p568_p2 = scmp.lt.s32.totalorder %s562_s7, %s562_s7 }
   0xf   :  { %462 = vmatprep.subr.bf16.mxu0 %v590_v25  ;;  %482 = vmatprep.subr.bf16.mxu1 %v590_v25 }
  0x10   :  { %p569_p3 = por %p568_p2, %p567_p1 }
  0x12   :  { %463 = vmatpush3.bf16.msra.mxu0 %v652_v27  ;;  %483 = vmatpush3.bf16.msra.mxu1 %v652_v27  ;;  %p570_p4 = pnand %p569_p3, %p563_p0 }
  0x13   :  { %464 = vmatprep.subr.bf16.mxu0 %v590_v25  ;;  %484 = vmatprep.subr.bf16.mxu1 %v590_v25 }
  0x16   :  { %465 = vmatpush3.bf16.msra.mxu0 %v661_v28  ;;  %485 = vmatpush3.bf16.msra.mxu1 %v661_v28 }
  0x17   :  { %466 = vmatprep.subr.bf16.mxu0 %v590_v25  ;;  %486 = vmatprep.subr.bf16.mxu1 %v590_v25 }
  0x1a   :  { %467 = vmatpush3.bf16.msra.mxu0 %v670_v29  ;;  %487 = vmatpush3.bf16.msra.mxu1 %v670_v29 }
  0x1b   :  { %468 = vmatprep.subr.bf16.mxu0 %v590_v25  ;;  %488 = vmatprep.subr.bf16.mxu1 %v590_v25 }
  0x1e   :  { %469 = vmatpush3.bf16.msra.mxu0 %v679_v30  ;;  %489 = vmatpush3.bf16.msra.mxu1 %v679_v30 }
  0x1f   :  { %470 = vmatprep.subr.bf16.mxu0 %v590_v25  ;;  %490 = vmatprep.subr.bf16.mxu1 %v590_v25 }
  0x22   :  { %471 = vmatpush3.bf16.msra.mxu0 %v695_v47  ;;  %491 = vmatpush3.bf16.msra.mxu1 %v695_v47 }
  0x23   :  { %472 = vmatprep.subr.bf16.mxu0 %v590_v25  ;;  %492 = vmatprep.subr.bf16.mxu1 %v590_v25 }
  0x26   :  { %473 = vmatpush3.bf16.msra.mxu0 %v704_v48  ;;  %493 = vmatpush3.bf16.msra.mxu1 %v704_v48 }
  0x27   :  { %498 = vmatprep.subr.bf16.mxu0 %v590_v25  ;;  %518 = vmatprep.subr.bf16.mxu1 %v590_v25 }
  0x81   :  { %v38_v8 = vpop.permute.xlu0 %37  ;;  %v230_v9 = vpop.permute.xlu1 %229 }
  0x82   :  { %vm43_vm0 = vcmp.eq.s32.totalorder %v38_v8, %v401_v7  ;;  %vm231_vm1 = vcmp.eq.s32.totalorder %v230_v9, %v401_v7 }
  0x83   :  { %v44_v10 = vsel %vm43_vm0, %v620_v6, 128  ;;  %v627_v12 = vsel %vm231_vm1, %v620_v6, 128 }
  0x84   :  { %v46_v11 = vshra.s32 %v44_v10, 16  ;;  %v234_v20 = vshra.s32 %v627_v12, 16  ;;  %v45_v31 = vand.u32 65535, %v44_v10  ;;  %v233_v36 = vand.u32 65535, %v627_v12 }
  0x86   :  { %v300_v13 = vpop.permute.xlu1 %299  ;;  %v160_v14 = vpop.permute.xlu0 %159  ;;  %v48_v15 = vcvt.s32.f32 %v46_v11  ;;  %v236_v23 = vcvt.s32.f32 %v234_v20  ;;  %v47_v33 = vcvt.s32.f32 %v45_v31  ;;  %v235_v44 = vcvt.s32.f32 %v233_v36 }
  0x87   :  { %vm301_vm2 = vcmp.eq.s32.totalorder %v300_v13, %v401_v7  ;;  %vm161_vm3 = vcmp.eq.s32.totalorder %v160_v14, %v401_v7 }
  0x88   :  { %v302_v16 = vsel %vm301_vm2, %v620_v6, 128  ;;  %v162_v17 = vsel %vm161_vm3, %v620_v6, 128  ;;  %49 = vmin.xlane.f32.xlu1 %v48_v15 }
  0x89   :  { %v164_v18 = vshra.s32 %v162_v17, 16  ;;  %v304_v19 = vshra.s32 %v302_v16, 16  ;;  %v163_v34 = vand.u32 65535, %v162_v17  ;;  %v303_v37 = vand.u32 65535, %v302_v16 }
  0x8b   :  { %v166_v21 = vcvt.s32.f32 %v164_v18  ;;  %v306_v22 = vcvt.s32.f32 %v304_v19  ;;  %v165_v40 = vcvt.s32.f32 %v163_v34  ;;  %v305_v43 = vcvt.s32.f32 %v303_v37 }
  0x8d   :  { %167 = vmin.xlane.f32.xlu0 %v166_v21  ;;  %307 = vmin.xlane.f32.xlu1 %v306_v22 }
  0x91   :  { %237 = vmin.xlane.f32.xlu0 %v236_v23 }
 0x115   :  { %v50_v32 = vpop.xlane.xlu1 %49 }
 0x116   :  { %vm51_vm4 = vcmp.eq.f32.partialorder %v48_v15, %v50_v32  ;;  %v56_v49 = vcvt.f32.s32 %v50_v32 }
 0x117   :  { %v52_v35 = vsel %vm51_vm4, %v47_v33, inf }
 0x118   :  { %53 = vmin.xlane.f32.xlu0 %v52_v35  ;;  %v57_v51 = vshll.u32 %v56_v49, 16 }
 0x11a   :  { %v168_v38 = vpop.xlane.xlu0 %167  ;;  %v689_v39 = vpop.xlane.xlu1 %307 }
 0x11b   :  { %vm169_vm5 = vcmp.eq.f32.partialorder %v166_v21, %v168_v38  ;;  %vm309_vm6 = vcmp.eq.f32.partialorder %v306_v22, %v689_v39  ;;  %v174_v53 = vcvt.f32.s32 %v168_v38  ;;  %v314_v3 = vcvt.f32.s32 %v689_v39 }
 0x11c   :  { %v170_v41 = vsel %vm169_vm5, %v165_v40, inf  ;;  %v310_v45 = vsel %vm309_vm6, %v305_v43, inf  ;;  %vm380_vm5 = vcmask 261120   ;;  %vm382_vm6 = vcmask 523264  }
 0x11d   :  { %171 = vmin.xlane.f32.xlu1 %v170_v41  ;;  %v175_v56 = vshll.u32 %v174_v53, 16  ;;  %v315_v7 = vshll.u32 %v314_v3, 16 }
 0x11e   :  { %v238_v42 = vpop.xlane.xlu0 %237 }
 0x11f   :  { %vm239_vm7 = vcmp.eq.f32.partialorder %v236_v23, %v238_v42  ;;  %v244_v63 = vcvt.f32.s32 %v238_v42 }
 0x120   :  { %v240_v46 = vsel %vm239_vm7, %v235_v44, inf  ;;  %vm384_vm7 = vcmask 785408  }
 0x121   :  { %311 = vmin.xlane.f32.xlu1 %v310_v45  ;;  %241 = vmin.xlane.f32.xlu0 %v240_v46  ;;  %v245_v1 = vshll.u32 %v244_v63, 16 }
 0x1a5   :  { %v54_v50 = vpop.xlane.xlu0 %53 }
 0x1a6   :  { %v55_v52 = vcvt.f32.s32 %v54_v50 }
 0x1a8   :  { %v58_v54 = vadd.s32 %v57_v51, %v55_v52 }
 0x1aa   :  { %vm59_vm9 = vcmp.ge.s32.totalorder %v58_v54, 16  ;;  %v172_v55 = vpop.xlane.xlu1 %171 }
 0x1ab   :  { %v60_v57 = vsel %vm59_vm9, 0, %v58_v54  ;;  %v173_v58 = vcvt.f32.s32 %v172_v55 }
 0x1ac   :  { %vm61_vm10 = vcmp.eq.s32.totalorder %v620_v6, %v60_v57 }
 0x1ad   :  { %v176_v59 = vadd.s32 %v175_v56, %v173_v58  ;;  %vm411_vm11 = vmpackc.low %vm61_vm10, %vm61_vm10 }
 0x1ae   :  { %475 = vmatmul.mubr.msk.bf16.vlgmr.msra.gmra.mrb[0].mxu0 %vm411_vm11, %v592_v60  ;;  %v242_v62 = vpop.xlane.xlu0 %241  ;;  %v312_v2 = vpop.xlane.xlu1 %311 }
 0x1af   :  { %vm177_vm12 = vcmp.ge.s32.totalorder %v176_v59, 16  ;;  %499 = vmatpush3.bf16.msra.mxu0 %v635_v24  ;;  %514 = vmatprep.mubr.msk.bf16.mxu0 %vm591_vm8, %v590_v25  ;;  %v243_v0 = vcvt.f32.s32 %v242_v62  ;;  %v313_v5 = vcvt.f32.s32 %v312_v2 }
 0x1b0   :  { %v178_v61 = vsel %vm177_vm12, 0, %v176_v59  ;;  %500 = vmatprep.subr.bf16.mxu0 %v590_v25 }
 0x1b1   :  { %vm179_vm13 = vcmp.eq.s32.totalorder %v620_v6, %v178_v61  ;;  %v246_v4 = vadd.s32 %v245_v1, %v243_v0  ;;  %v316_v8 = vadd.s32 %v315_v7, %v313_v5 }
 0x1b2   :  { %vm414_vm14 = vmpackc.low %vm179_vm13, %vm179_vm13 }
 0x1b3   :  { %501 = vmatpush3.bf16.msra.mxu0 %v643_v26  ;;  %495 = vmatmul.mubr.msk.bf16.vlgmr.msra.gmra.mrb[0].mxu1 %vm414_vm14, %v592_v60  ;;  %vm247_vm15 = vcmp.ge.s32.totalorder %v246_v4, 16  ;;  %vm317_vm0 = vcmp.ge.s32.totalorder %v316_v8, 16 }
 0x1b4   :  { %519 = vmatpush3.bf16.msra.mxu1 %v635_v24  ;;  %502 = vmatprep.subr.bf16.mxu0 %v590_v25  ;;  %v248_v9 = vsel %vm247_vm15, 0, %v246_v4  ;;  %v318_v10 = vsel %vm317_vm0, 0, %v316_v8 }
 0x1b5   :  { %520 = vmatprep.subr.bf16.mxu1 %v590_v25  ;;  %534 = vmatprep.mubr.msk.bf16.mxu1 %vm591_vm8, %v590_v25  ;;  %vm249_vm1 = vcmp.eq.s32.totalorder %v620_v6, %v248_v9  ;;  %vm319_vm3 = vcmp.eq.s32.totalorder %v620_v6, %v318_v10 }
 0x1b6   :  { %vm417_vm2 = vmpackc.low %vm249_vm1, %vm249_vm1 }
 0x1b7   :  { %503 = vmatpush3.bf16.msra.mxu0 %v652_v27  ;;  %vm420_vm4 = vmpackc.low %vm319_vm3, %vm319_vm3 }
 0x1b8   :  { %521 = vmatpush3.bf16.msra.mxu1 %v643_v26  ;;  %504 = vmatprep.subr.bf16.mxu0 %v590_v25 }
 0x1b9   :  { %522 = vmatprep.subr.bf16.mxu1 %v590_v25 }
 0x1bb   :  { %505 = vmatpush3.bf16.msra.mxu0 %v661_v28 }
 0x1bc   :  { %523 = vmatpush3.bf16.msra.mxu1 %v652_v27  ;;  %506 = vmatprep.subr.bf16.mxu0 %v590_v25 }
 0x1bd   :  { %524 = vmatprep.subr.bf16.mxu1 %v590_v25 }
 0x1bf   :  { %507 = vmatpush3.bf16.msra.mxu0 %v670_v29 }
 0x1c0   :  { %525 = vmatpush3.bf16.msra.mxu1 %v661_v28  ;;  %508 = vmatprep.subr.bf16.mxu0 %v590_v25 }
 0x1c1   :  { %526 = vmatprep.subr.bf16.mxu1 %v590_v25 }
 0x1c3   :  { %509 = vmatpush3.bf16.msra.mxu0 %v679_v30 }
 0x1c4   :  { %527 = vmatpush3.bf16.msra.mxu1 %v670_v29  ;;  %510 = vmatprep.subr.bf16.mxu0 %v590_v25 }
 0x1c5   :  { %528 = vmatprep.subr.bf16.mxu1 %v590_v25 }
 0x1c7   :  { %511 = vmatpush3.bf16.msra.mxu0 %v695_v47 }
 0x1c8   :  { %529 = vmatpush3.bf16.msra.mxu1 %v679_v30  ;;  %512 = vmatprep.subr.bf16.mxu0 %v590_v25 }
 0x1c9   :  { %530 = vmatprep.subr.bf16.mxu1 %v590_v25 }
 0x1cb   :  { %513 = vmatpush3.bf16.msra.mxu0 %v704_v48 }
 0x1cc   :  { %531 = vmatpush3.bf16.msra.mxu1 %v695_v47 }
 0x1cd   :  { %532 = vmatprep.subr.bf16.mxu1 %v590_v25 }
 0x1ce   :  { %515 = vmatmul.mubr.msk.bf16.vlgmr.msra.gmra.mrb[4].mxu0 %vm417_vm2, %v592_v60 }
 0x1d0   :  { %533 = vmatpush3.bf16.msra.mxu1 %v704_v48 }
 0x1d3   :  { %535 = vmatmul.mubr.msk.bf16.vlgmr.msra.gmra.mrb[4].mxu1 %vm420_vm4, %v592_v60 }
 0x281   :  { %v147_v11 = vpop.f32.mrb[0].mxu0 }
 0x282   :  { %v476_v12 = vpop.f32.mrb[1].mxu0 }
 0x283   :  { %v150_v13 = vpop.f32.mrb[2].mxu0 }
 0x284   :  { %v477_v14 = vpop.f32.mrb[3].mxu0 }
 0x286   :  { %v217_v15 = vpop.f32.mrb[0].mxu1 }
 0x287   :  { %v496_v16 = vpop.f32.mrb[1].mxu1  ;;  %224 = vrot.lane.b32.xlu0 %v217_v15, %s593_s2 }
 0x288   :  { %v220_v17 = vpop.f32.mrb[2].mxu1 }
 0x289   :  { %v497_v18 = vpop.f32.mrb[3].mxu1 }
 0x28b   :  { %154 = vrot.lane.b32.xlu0 %v147_v11, %s593_s2 }
 0x2a1   :  { %v287_v19 = vpop.f32.mrb[4].mxu0 }
 0x2a2   :  { %294 = vrot.lane.b32.xlu1 %v287_v19, %s593_s2  ;;  %v516_v20 = vpop.f32.mrb[5].mxu0 }
 0x2a3   :  { %v290_v21 = vpop.f32.mrb[6].mxu0 }
 0x2a4   :  { %v517_v6 = vpop.f32.mrb[7].mxu0 }
 0x2a6   :  { %v357_v22 = vpop.f32.mrb[4].mxu1 }
 0x2a7   :  { %v536_v23 = vpop.f32.mrb[5].mxu1  ;;  %364 = vrot.lane.b32.xlu1 %v357_v22, %s593_s2 }
 0x2a8   :  { %v360_v24 = vpop.f32.mrb[6].mxu1 }
 0x2a9   :  { %v537_v25 = vpop.f32.mrb[7].mxu1 }
 0x2f9   :  { %v225_v26 = vpop.permute.xlu0 %224 }
 0x2fa   :  { %v227_v27 = vadd.f32 %v225_v26, %v217_v15 }
 0x2fc   :  { %369 = vrot.lane.b32.xlu1 %v227_v27, %s594_s30 }
 0x2fd   :  { %v155_v32 = vpop.permute.xlu0 %154 }
 0x2fe   :  { %v157_v34 = vadd.f32 %v155_v32, %v147_v11 }
 0x314   :  { %v295_v28 = vpop.permute.xlu1 %294 }
 0x315   :  { %v297_v29 = vadd.f32 %v295_v28, %v287_v19 }
 0x317   :  { %373 = vrot.lane.b32.xlu0 %v297_v29, %s595_s4 }
 0x319   :  { %v365_v30 = vpop.permute.xlu1 %364 }
 0x31a   :  { %v367_v31 = vadd.f32 %v365_v30, %v357_v22 }
 0x31c   :  { %377 = vrot.lane.b32.xlu1 %v367_v31, %s593_s2 }
 0x36e   :  { %v370_v33 = vpop.permute.xlu1 %369 }
 0x36f   :  { %v381_v36 = vsel %vm380_vm5, %v157_v34, %v370_v33 }
 0x389   :  { %v374_v35 = vpop.permute.xlu0 %373 }
 0x38a   :  { %v383_v37 = vsel %vm382_vm6, %v381_v36, %v374_v35 }
 0x38e   :  { %v378_v38 = vpop.permute.xlu1 %377 }
 0x38f   :  { %v385_v39 = vsel %vm384_vm7, %v383_v37, %v378_v38 }
 0x390   :  { %386 = vst [vmem:[#allocation2] sm:$0xff] %v385_v39 }
 0x391   :  { %573 = shalt.err (!%p570_p4)
}
 0x392   :  { %s574_s10 = scalar_lea.hbm %s768_s3, 128 }
 0x393   :  { %p575_p5 = scmp.ne.s32.totalorder %s768_s3, %s574_s10  ;;  %p578_p6 = scmp.lt.u32.totalorder %s574_s10, %s768_s3 }
 0x395   :  { %p580_p7 = pnand %p578_p6, %p575_p5 }
 0x397   :  { %583 = shalt.err (!%p580_p7)
}
 0x398   :  { %396 = dma.vmem_to_hbm [thread:$0]  %s394_s6, 128, %s768_s3, [#allocation3]  }
 0x399   :  { %584 = dma.done.wait [#allocation3], 128  }
 0x39a   :  { %585 = vsyncadd [#allocation3], 4294967168 }
 0x39b   :  { %400 = vsyncpa [#allocation3], 1 }

</bundles_post_ra>
